<compile_context>
chip_gen: v5e
topology: v5e:2x2
jax: 0.10.0
libtpu: 0.0.40
codegen_flags: <defaults>
</compile_context>

<pallas_src>
import functools

import jax
import jax.numpy as jnp
from jax.experimental import pallas as pl
from jax.experimental.pallas import tpu as pltpu

_MIB = 1024 * 1024


def _pad_rows_kernel(x_ref, o_ref, *, valid_cols):
    """x_ref: (bt, S*D) valid data; o_ref: (bt, N*D) padded output rows."""
    rows, cols = o_ref.shape
    # Copy the valid part first (single store per element), ...
    o_ref[:, :valid_cols] = x_ref[...]
    # ... then zero only the padding tail (statically elided when S == N).
    if valid_cols < cols:
        o_ref[:, valid_cols:] = jnp.zeros((rows, cols - valid_cols), o_ref.dtype)


def _tpu_generation_info():
    """Return (per-step VMEM budget in bytes, assumed TensorCores per chip)."""
    try:
        vmem_phys = int(pltpu.get_tpu_info().vmem_capacity_bytes)
    except Exception:
        # Unknown chip: conservative budget; assume 2 TCs so a megacore chip
        # still gets a balanced grid.
        return 16 * _MIB, 2
    if vmem_phys <= 80 * _MIB:
        # v7x-class: 64 MiB VMEM per TC, 2 TensorCores per chip.
        return 20 * _MIB, 2
    # v5e / v6e class: 128 MiB VMEM, single TensorCore.
    return 40 * _MIB, 1


def _round_up(x, m):
    return ((x + m - 1) // m) * m


def _choose_batch_tile(B, S, N, D, itemsize, budget, num_tc):
    """Batch rows per grid step: sublane-aligned, VMEM-sized, TC-balanced."""
    # Packed-dtype sublane multiple: 8 rows for f32, 16 for bf16, 32 for int8.
    sub = 8 * max(1, 4 // max(1, itemsize))
    if B <= sub:
        # One grid step; block second-to-last dim == full array dim satisfies
        # the (8,128) block constraint trivially.
        return B
    per_row = 2 * (S + N) * D * itemsize          # double-buffered in + out
    bt_cap = max(sub, (budget // per_row) // sub * sub)
    full = (B // sub) * sub                       # largest in-bounds aligned tile
    if num_tc > 1:
        # Split into an even number of (near-)equal steps so both TensorCores
        # of a megacore chip get balanced work.
        steps = max(num_tc, num_tc * pl.cdiv(pl.cdiv(B, bt_cap), num_tc))
        bt = _round_up(pl.cdiv(B, steps), sub)
        return max(sub, min(bt, bt_cap, full))
    # Single TensorCore: biggest tile that fits the budget, no forced split.
    return max(sub, min(bt_cap, full))


def time_decay_wrapper_forward(batch_cascade, batch_time_interval, weight_decay,
                               number_of_snapshot, padding=True,
                               force_pallas=False):
    """JAX/Pallas equivalent of TimeDecayWrapper.forward.

    batch_time_interval and weight_decay are accepted for interface parity but
    (exactly like the PyTorch wrapper) do not influence the returned value.
    """
    del batch_time_interval, weight_decay  # unused by the wrapper's forward
    if not padding:
        return batch_cascade

    B, S, D = batch_cascade.shape
    N = number_of_snapshot
    assert N >= S, "number_of_snapshot must be >= current snapshot count"
    if N == S:
        # torch.cat with an empty zero tensor is the identity.
        return batch_cascade

    itemsize = batch_cascade.dtype.itemsize
    total_bytes = (B * S * D + B * N * D) * itemsize

    # Tiny-problem fast path: launch + pipeline ramp dominates and B<8 rows
    # under-fill the sublanes; jnp.pad lets XLA fuse the pad into its consumer
    # (removes the whole HBM round trip of a standalone kernel).
    if not force_pallas and (B < 8 or total_bytes < 256 * 1024):
        return jnp.pad(batch_cascade, ((0, 0), (0, N - S), (0, 0)))

    budget, num_tc = _tpu_generation_info()
    bt = _choose_batch_tile(B, S, N, D, itemsize, budget, num_tc)
    grid_b = pl.cdiv(B, bt)

    # Lane-dense 2-D views: last (lane) dim is the whole (snapshot, feature)
    # row, so stores are long unmasked vst runs rather than 32-wide partials.
    x2d = batch_cascade.reshape(B, S * D)

    kernel = functools.partial(_pad_rows_kernel, valid_cols=S * D)
    out2d = pl.pallas_call(
        kernel,
        out_shape=jax.ShapeDtypeStruct((B, N * D), batch_cascade.dtype),
        grid=(grid_b,),
        in_specs=[pl.BlockSpec((bt, S * D), lambda i: (i, 0))],
        out_specs=pl.BlockSpec((bt, N * D), lambda i: (i, 0)),
        compiler_params=pltpu.CompilerParams(
            dimension_semantics=("parallel",),
            # Explicit scoped-VMEM limit: budget already covers the
            # double-buffered in+out tiles; add headroom for compiler scratch.
            vmem_limit_bytes=budget + 8 * _MIB),
        cost_estimate=pl.CostEstimate(
            flops=0,
            transcendentals=0,
            bytes_accessed=total_bytes),
    )(x2d)

    return out2d.reshape(B, N, D)


if __name__ == "__main__":
    # Small, deterministic example shapes.
    number_of_snapshot = 8   # N
    batch = 2                # B
    cur_snapshots = 5        # S  (< N, so real padding happens)
    hidden = 32              # D

    key = jax.random.PRNGKey(0)
    k_w, k_c, k_t, k_big = jax.random.split(key, 4)

    # Parameter from TimeDecay.__init__ (unused by the wrapper's forward).
    weight_decay = jax.random.normal(
        k_w, (number_of_snapshot, number_of_snapshot), dtype=jnp.float32)
    batch_cascade = jax.random.normal(
        k_c, (batch, cur_snapshots, hidden), dtype=jnp.float32)
    batch_time_interval = jax.random.normal(
        k_t, (batch, cur_snapshots), dtype=jnp.float32)

    # Reference: torch.cat((x, zeros), dim=1) == zero-pad along axis 1.
    ref = jnp.pad(batch_cascade,
                  ((0, 0), (0, number_of_snapshot - cur_snapshots), (0, 0)))

    # 1) Default path (tiny problem -> fused jnp.pad fast path).
    out_fast = time_decay_wrapper_forward(
        batch_cascade, batch_time_interval, weight_decay, number_of_snapshot)
    out_fast = jax.block_until_ready(out_fast)
    assert out_fast.shape == (batch, number_of_snapshot, hidden)
    assert jnp.allclose(out_fast, ref), "fast path mismatch vs reference"

    # 2) Forced Pallas path on the same tiny inputs (validates the kernel).
    out_pl = time_decay_wrapper_forward(
        batch_cascade, batch_time_interval, weight_decay, number_of_snapshot,
        force_pallas=True)
    out_pl = jax.block_until_ready(out_pl)
    assert jnp.allclose(out_pl, ref), "pallas path mismatch vs reference"

    # 3) Slightly larger batch to exercise multi-row tiles / the grid path.
    big_batch = 24
    big_cascade = jax.random.normal(
        k_big, (big_batch, cur_snapshots, hidden), dtype=jnp.float32)
    big_interval = jnp.zeros((big_batch, cur_snapshots), jnp.float32)
    out_big = time_decay_wrapper_forward(
        big_cascade, big_interval, weight_decay, number_of_snapshot,
        force_pallas=True)
    out_big = jax.block_until_ready(out_big)
    ref_big = jnp.pad(big_cascade,
                      ((0, 0), (0, number_of_snapshot - cur_snapshots), (0, 0)))
    assert jnp.allclose(out_big, ref_big), "pallas grid path mismatch"

    print("KERNEL_OK")
</pallas_src>

<mosaic_0001>
module attributes {stable_mosaic.version = 11 : i64} {
  func.func @_pad_rows_kernel(%arg0: i32, %arg1: memref<2x160xf32, #tpu.memory_space<vmem>>, %arg2: memref<2x256xf32, #tpu.memory_space<vmem>>) attributes {dimension_semantics = [#tpu.dimension_semantics<parallel>], iteration_bounds = array<i64: 1>, scalar_prefetch = 0 : i64, scratch_operands = 0 : i64, tpu.core_type = #tpu.core_type<tc>, window_params = [{transform_indices = @transform_0, window_bounds = array<i64: 2, 160>}, {transform_indices = @transform_1, window_bounds = array<i64: 2, 256>}]} {
    %c0 = arith.constant 0 : index
    %c0_0 = arith.constant 0 : index
    %0 = vector.load %arg1[%c0, %c0_0] : memref<2x160xf32, #tpu.memory_space<vmem>>, vector<2x160xf32>
    %c0_1 = arith.constant 0 : index
    %c0_2 = arith.constant 0 : index
    %1 = vector.load %arg2[%c0_1, %c0_2] : memref<2x256xf32, #tpu.memory_space<vmem>>, vector<2x160xf32>
    tpu.vector_store %arg2[%c0_1, %c0_2], %0 {strides = array<i32>} : memref<2x256xf32, #tpu.memory_space<vmem>>, vector<2x160xf32>,
    %cst = arith.constant 0.000000e+00 : f32
    %2 = vector.broadcast %cst : f32 to vector<2x96xf32>
    %c0_3 = arith.constant 0 : index
    %c160 = arith.constant 160 : index
    %3 = vector.load %arg2[%c0_3, %c160] : memref<2x256xf32, #tpu.memory_space<vmem>>, vector<2x96xf32>
    tpu.vector_store %arg2[%c0_3, %c160], %2 {strides = array<i32>} : memref<2x256xf32, #tpu.memory_space<vmem>>, vector<2x96xf32>,
    return
  }
  func.func @transform_0(%arg0: i32) -> (i32, i32) {
    %c0_i32 = arith.constant 0 : i32
    %c0_i32_0 = arith.constant 0 : i32
    return %arg0, %c0_i32 : i32, i32
  }
  func.func @transform_1(%arg0: i32) -> (i32, i32) {
    %c0_i32 = arith.constant 0 : i32
    %c0_i32_0 = arith.constant 0 : i32
    return %arg0, %c0_i32 : i32, i32
  }
}

</mosaic_0001>

<bundles_post_ra>
// kernel: tpu_custom_call.1
= control target key start
LH: loop header
LB: loop body
LE: loop exit
PB: predicated region body
PF: predicated region fallthrough
CT: control target
= control target key end

     0   :  { %6 = vsyncpa [#allocation3], 0  ;;  %s121_s0 = inlined_call_operand.hbm [shape: f32[2,160], index: 0, kind: input, shape index: {}]   ;;  %s122_s1 = inlined_call_operand.hbm [shape: f32[2,256], index: 1, kind: output, shape index: {}]  }
   0x1   :  { %7 = vsyncpa [#allocation4], 0  ;;  %s13_s8 = sshll.u32 %s121_s0, 4  ;;  %s102_s9 = smov [#allocation2]   ;;  %s14_s8 = int_to_ptr.hbm [resolvable:$true] %s13_s8 }
   0x2   :  { %s15_s10 = sshll.u32 %s102_s9, 4  ;;  %s16_s10 = int_to_ptr.vmem [resolvable:$true] %s15_s10 }
   0x3   :  { %18 = dma.hbm_to_vmem [thread:$0]  %s14_s8, 64, %s16_s10, [#allocation3]  }
   0x4   :  { %98 = dma.done.wait [#allocation3], 64  }
   0x5   :  { %99 = vsyncadd [#allocation3], 4294967232  ;;  %vm24_vm0 = vcmask 1041408   ;;  %vm25_vm1 = vcmask 257026   ;;  %s103_s11 = smov [#allocation5]   ;;  %s37_s15 = sshll.u32 %s122_s1, 4  ;;  %s38_s15 = int_to_ptr.hbm [resolvable:$true] %s37_s15 }
   0x6   :  { %s35_s12 = sshll.u32 %s103_s11, 4  ;;  %vm26_vm2 = vmor %vm25_vm1, %vm24_vm0  ;;  %vm28_vm3 = vcmask 1041664   ;;  %v23_v0 = vld [vmem:[#allocation2] sm:$0xf]  ;;  %v104_v1 = vmov 0.0   ;;  %s36_s12 = int_to_ptr.vmem [resolvable:$true] %s35_s12 }
   0x7   :  { %27 = vst.msk [vmem:[#allocation5] sm:$0xf] %vm26_vm2, %v23_v0 }
   0x8   :  { %29 = vst.msk [vmem:[#allocation5 + $0x2] sm:$0x3] %vm28_vm3, %v104_v1 }
   0x9   :  { %40 = dma.vmem_to_hbm [thread:$0]  %s36_s12, 64, %s38_s15, [#allocation4]  }
   0xa   :  { %100 = dma.done.wait [#allocation4], 64  }
   0xb   :  { %101 = vsyncadd [#allocation4], 4294967232 }
   0xc   :  { %45 = vsyncpa [#allocation3], 1 }
   0xd   :  { %46 = vsyncpa [#allocation4], 1 }

</bundles_post_ra>
